<compile_context>
chip_gen: v6e
topology: v6e:2x2x1
jax: 0.10.0
libtpu: 0.0.40
codegen_flags: <defaults>
</compile_context>

<pallas_src>
import math
import jax
import jax.numpy as jnp
from jax.experimental import pallas as pl
from jax.experimental.pallas import tpu as pltpu

EPS = 1e-8        # RMSNorm eps (matches the PyTorch module)
NEG_INF = -1e30   # finite "-inf" for masked scores (no NaN on fully-masked rows)


# ---------------------------------------------------------------------------
# in-kernel helpers
# ---------------------------------------------------------------------------
def _rmsnorm(x, g, d):
    # RMSNorm(p=-1, bias=False): rms = ||x||_2 * d**-0.5 ; out = g * x / (rms + eps)
    norm = jnp.sqrt(jnp.sum(x * x, axis=-1, keepdims=True))
    rms = norm * (d ** -0.5)
    return g * (x / (rms + EPS))


def _gelu_exact(x):
    # nn.GELU() default (erf-based, exact).  Kept exact to match the module;
    # jax.nn.gelu(approximate=True) would move this work onto the EUP slot if
    # the tolerance budget allows.
    return 0.5 * x * (1.0 + jax.lax.erf(x * (1.0 / math.sqrt(2.0))))


# ---------------------------------------------------------------------------
# Pallas kernel: one EncoderBlock forward for one batch element (grid over B)
# ---------------------------------------------------------------------------
def make_encoder_kernel(n_heads):
    def kernel(x_ref, bias_ref,
               wq_ref, wk_ref, wv_ref, wo_ref, b_out_ref,
               wff1_ref, b_ff1_ref, wff2_ref, b_ff2_ref,
               g1_ref, g2_ref, o_ref):
        T, D = x_ref.shape
        hd = D // n_heads
        bf16 = jnp.bfloat16

        x = x_ref[...]                                   # (T, D) f32

        # ---- ln_1 (f32)
        h = _rmsnorm(x, g1_ref[...], D)
        h_bf = h.astype(bf16)

        # ---- QKV projections, produced directly in (D, T) orientation.
        # w is the PyTorch (out, in) weight; contracting both lane ("in") dims
        # lets the MXU pass absorb the orientation flip, so no explicit XLU
        # transpose of the activations is needed.  Softmax scale is pre-folded
        # into wq (in_proj has no bias, so this is exact).
        def proj_dt(w_ref):
            return jax.lax.dot_general(
                w_ref[...], h_bf, (((1,), (1,)), ((), ())),
                preferred_element_type=jnp.float32)       # (D, T) f32

        q = proj_dt(wq_ref).reshape(n_heads, hd, T)       # sublane-only reshape
        k = proj_dt(wk_ref).reshape(n_heads, hd, T)
        v = proj_dt(wv_ref).reshape(n_heads, hd, T)

        # ---- attention, all heads in one rank-3 batched matmul
        # TODO(synk): for T beyond ~512, replace this with flash-style key
        # tiling (online softmax over an extra "arbitrary" grid axis) instead
        # of materializing the full (nh, T, T) score tensor.
        s = jnp.einsum('hdq,hdk->hqk', q.astype(bf16), k.astype(bf16),
                       preferred_element_type=jnp.float32)            # (nh, T, T)
        s = s + bias_ref[...][None, :, :]                 # additive key-padding mask

        m = jnp.max(s, axis=-1, keepdims=True)
        p = jnp.exp(s - m)
        denom = jnp.sum(p, axis=-1, keepdims=True)
        p = (p * pl.reciprocal(denom, approx=True)).astype(bf16)      # EUP divide, bf16 probs

        ctx = jnp.einsum('hdk,hqk->hdq', v.astype(bf16), p,
                         preferred_element_type=jnp.float32)          # (nh, hd, T)

        # ---- output projection with the head-merge folded in.
        # ctx rows are already heads-concatenated (h*hd + e); contracting that
        # row dim against wo_t (in, out) yields (T, D) directly -> no
        # activation transpose before the residual.
        attn = jax.lax.dot_general(
            ctx.reshape(D, T).astype(bf16), wo_ref[...],
            (((0,), (0,)), ((), ())),
            preferred_element_type=jnp.float32) + b_out_ref[...]      # (T, D)
        x1 = h + attn         # residual adds the ln_1 output (matches the module)

        # ---- ln_2 + feed-forward + residual (pre-transposed (in,out) weights,
        # plain last-dim x first-dim contractions)
        h2 = _rmsnorm(x1, g2_ref[...], D)
        ff = jnp.dot(h2.astype(bf16), wff1_ref[...],
                     preferred_element_type=jnp.float32) + b_ff1_ref[...]   # (T, 4D)
        ff = _gelu_exact(ff)
        ff = jnp.dot(ff.astype(bf16), wff2_ref[...],
                     preferred_element_type=jnp.float32) + b_ff2_ref[...]   # (T, D)
        o_ref[...] = h2 + ff

    return kernel


# ---------------------------------------------------------------------------
# one-time (per model) weight preparation -- NOT per forward call
# ---------------------------------------------------------------------------
def prepare_params(params, n_heads):
    D = params["w_out"].shape[0]
    assert D % n_heads == 0, "dim must be divisible by n_heads"
    hd = D // n_heads
    bf16 = jnp.bfloat16
    w_in = params["w_in"]                                  # (3D, D), PyTorch (out, in)
    return {
        "wq": (w_in[0 * D:1 * D] * (hd ** -0.5)).astype(bf16),   # scale folded into Q
        "wk": w_in[1 * D:2 * D].astype(bf16),
        "wv": w_in[2 * D:3 * D].astype(bf16),
        "wo_t": params["w_out"].T.astype(bf16),            # (in = concat-heads, out)
        "b_out": params["b_out"].astype(jnp.float32),
        "wff1_t": params["w_ff1"].T.astype(bf16),          # (D, 4D)
        "b_ff1": params["b_ff1"].astype(jnp.float32),
        "wff2_t": params["w_ff2"].T.astype(bf16),          # (4D, D)
        "b_ff2": params["b_ff2"].astype(jnp.float32),
        "g1": params["g1"].astype(jnp.float32),
        "g2": params["g2"].astype(jnp.float32),
    }


# ---------------------------------------------------------------------------
# wrapper
# ---------------------------------------------------------------------------
def encoder_block_forward(x, prep, n_heads, mask=None):
    """x: (B, T, D) f32.  mask: key-padding mask reshapeable to (B, 1, T); 1=keep, 0=pad.
    prep: output of prepare_params (bf16, pre-transposed / pre-scaled weights)."""
    B, T, D = x.shape
    assert D % n_heads == 0, "dim must be divisible by n_heads"

    if mask is None:
        bias = jnp.zeros((B, 1, T), jnp.float32)
    else:
        m = jnp.asarray(mask, jnp.float32).reshape(B, 1, T)
        bias = jnp.where(m == 0.0, NEG_INF, 0.0).astype(jnp.float32)

    def whole(shape):        # grid-invariant -> single VMEM buffer (no double-buffering)
        return pl.BlockSpec(shape, lambda b: (0,) * len(shape),
                            pipeline_mode=pl.Buffered(1))

    def per_batch(shape):    # one batch element per grid step (batch dim squeezed)
        return pl.BlockSpec((None,) + shape, lambda b: (b,) + (0,) * len(shape))

    # Explicit VMEM budget: bf16 weights (single-buffered) + double-buffered
    # activation blocks + in-kernel temporaries, clamped to 3/4 of physical
    # VMEM so the same code fits v5e/v6e (128 MiB) and v7x (64 MiB).
    w_bytes = 2 * (3 * D * D + D * D + 8 * D * D)          # = 24*D^2 (bf16)
    act_bytes = 2 * 2 * 4 * T * D                          # double-buffered x / out (f32)
    tmp_bytes = (8 * n_heads * T * T                       # scores f32 + probs bf16
                 + 12 * 4 * T * D                          # h, q/k/v, ctx, x1, h2, attn
                 + 3 * 4 * T * 4 * D)                      # FFN hidden (f32 + gelu + bf16)
    est = w_bytes + act_bytes + tmp_bytes
    try:
        cap = pltpu.get_tpu_info().vmem_capacity_bytes * 3 // 4
    except Exception:
        cap = 48 * 1024 * 1024
    vmem_limit = int(min(cap, max(32 * 1024 * 1024, 2 * est)))

    # NOTE (v7x): with 2 TensorCores, keep B (the only "parallel" axis) even /
    # large enough; for tiny T also block several batch rows per step so the
    # matmul M dim fills the 256-wide MXU pass.  Toy shapes here don't need it.
    return pl.pallas_call(
        make_encoder_kernel(n_heads),
        out_shape=jax.ShapeDtypeStruct((B, T, D), jnp.float32),
        grid=(B,),
        in_specs=[
            per_batch((T, D)),        # x
            per_batch((1, T)),        # additive mask bias
            whole((D, D)),            # wq (pre-scaled by hd**-0.5)
            whole((D, D)),            # wk
            whole((D, D)),            # wv
            whole((D, D)),            # wo_t (in, out)
            whole((1, D)),            # b_out
            whole((D, 4 * D)),        # wff1_t (in, out)
            whole((1, 4 * D)),        # b_ff1
            whole((4 * D, D)),        # wff2_t (in, out)
            whole((1, D)),            # b_ff2
            whole((1, D)),            # g1
            whole((1, D)),            # g2
        ],
        out_specs=per_batch((T, D)),
        compiler_params=pltpu.CompilerParams(
            dimension_semantics=("parallel",),       # batch steps shard across TCs on v7x
            vmem_limit_bytes=vmem_limit),
    )(x, bias, prep["wq"], prep["wk"], prep["wv"], prep["wo_t"], prep["b_out"],
      prep["wff1_t"], prep["b_ff1"], prep["wff2_t"], prep["b_ff2"],
      prep["g1"], prep["g2"])


# ---------------------------------------------------------------------------
# pure-JAX f32 reference (mirrors the PyTorch EncoderBlock.forward)
# ---------------------------------------------------------------------------
def reference_encoder_block(x, mask, params, n_heads):
    B, T, D = x.shape
    hd = D // n_heads

    def rms(v, g):
        n = jnp.linalg.norm(v, axis=-1, keepdims=True)
        return g * (v / (n * D ** -0.5 + EPS))

    h = rms(x, params["g1"])
    qkv = h @ params["w_in"].T
    q, k, v = jnp.split(qkv, 3, axis=-1)
    split = lambda t: t.reshape(B, T, n_heads, hd).transpose(0, 2, 1, 3)
    q, k, v = split(q), split(k), split(v)

    s = jnp.einsum('bhqd,bhkd->bhqk', q, k) * hd ** -0.5
    if mask is not None:
        m = jnp.asarray(mask, jnp.float32).reshape(B, 1, 1, T)
        s = jnp.where(m == 0.0, NEG_INF, s)
    p = jax.nn.softmax(s, axis=-1)
    ctx = jnp.einsum('bhqk,bhkd->bhqd', p, v)
    attn = ctx.transpose(0, 2, 1, 3).reshape(B, T, D)
    attn = attn @ params["w_out"].T + params["b_out"]
    x1 = h + attn

    h2 = rms(x1, params["g2"])
    ff = jax.nn.gelu(h2 @ params["w_ff1"].T + params["b_ff1"], approximate=False)
    ff = ff @ params["w_ff2"].T + params["b_ff2"]
    return h2 + ff


# ---------------------------------------------------------------------------
# deterministic parameter init (PyTorch Linear convention: (out, in))
# ---------------------------------------------------------------------------
def init_params(key, dim):
    ks = jax.random.split(key, 9)
    n = lambda k, shape: 0.02 * jax.random.normal(k, shape, jnp.float32)
    return {
        "w_in":  n(ks[0], (3 * dim, dim)),
        "w_out": n(ks[1], (dim, dim)),
        "b_out": n(ks[2], (1, dim)),
        "w_ff1": n(ks[3], (4 * dim, dim)),
        "b_ff1": n(ks[4], (1, 4 * dim)),
        "w_ff2": n(ks[5], (dim, 4 * dim)),
        "b_ff2": n(ks[6], (1, dim)),
        "g1":    1.0 + n(ks[7], (1, dim)),
        "g2":    1.0 + n(ks[8], (1, dim)),
    }


# ---------------------------------------------------------------------------
if __name__ == "__main__":
    # TODO(synk): attn/mlp Dropout layers default to p=0.0 (identity), so they are omitted.
    B, T, D, NH = 2, 8, 32, 4
    key = jax.random.PRNGKey(0)
    kx, kp = jax.random.split(key)

    x = jax.random.normal(kx, (B, T, D), jnp.float32)
    params = init_params(kp, D)
    # key-padding mask: last key position of batch 1 is padding
    mask = jnp.ones((B, 1, T), jnp.float32).at[1, 0, T - 1].set(0.0)

    prep = prepare_params(params, NH)   # one-time bf16 / layout prep, not per call
    out = jax.block_until_ready(encoder_block_forward(x, prep, NH, mask=mask))
    ref = reference_encoder_block(x, mask, params, NH)

    assert out.shape == (B, T, D)
    assert bool(jnp.all(jnp.isfinite(out)))
    err = float(jnp.max(jnp.abs(out - ref)))
    assert err < 5e-2, f"max |err| = {err}"
    print("KERNEL_OK")
</pallas_src>

<mosaic_0001>
module attributes {stable_mosaic.version = 11 : i64} {
  func.func @kernel(%arg0: i32, %arg1: memref<1x8x32xf32, #tpu.memory_space<vmem>>, %arg2: memref<1x1x8xf32, #tpu.memory_space<vmem>>, %arg3: memref<32x32xbf16, #tpu.memory_space<vmem>>, %arg4: memref<32x32xbf16, #tpu.memory_space<vmem>>, %arg5: memref<32x32xbf16, #tpu.memory_space<vmem>>, %arg6: memref<32x32xbf16, #tpu.memory_space<vmem>>, %arg7: memref<1x32xf32, #tpu.memory_space<vmem>>, %arg8: memref<32x128xbf16, #tpu.memory_space<vmem>>, %arg9: memref<1x128xf32, #tpu.memory_space<vmem>>, %arg10: memref<128x32xbf16, #tpu.memory_space<vmem>>, %arg11: memref<1x32xf32, #tpu.memory_space<vmem>>, %arg12: memref<1x32xf32, #tpu.memory_space<vmem>>, %arg13: memref<1x32xf32, #tpu.memory_space<vmem>>, %arg14: memref<1x8x32xf32, #tpu.memory_space<vmem>>) attributes {dimension_semantics = [#tpu.dimension_semantics<parallel>], iteration_bounds = array<i64: 2>, scalar_prefetch = 0 : i64, scratch_operands = 0 : i64, tpu.core_type = #tpu.core_type<tc>, window_params = [{transform_indices = @transform_0, window_bounds = array<i64: 1, 8, 32>}, {transform_indices = @transform_1, window_bounds = array<i64: 1, 1, 8>}, {pipeline_mode = #tpu.pipeline_mode<synchronous>, transform_indices = @transform_2, window_bounds = array<i64: 32, 32>}, {pipeline_mode = #tpu.pipeline_mode<synchronous>, transform_indices = @transform_3, window_bounds = array<i64: 32, 32>}, {pipeline_mode = #tpu.pipeline_mode<synchronous>, transform_indices = @transform_4, window_bounds = array<i64: 32, 32>}, {pipeline_mode = #tpu.pipeline_mode<synchronous>, transform_indices = @transform_5, window_bounds = array<i64: 32, 32>}, {pipeline_mode = #tpu.pipeline_mode<synchronous>, transform_indices = @transform_6, window_bounds = array<i64: 1, 32>}, {pipeline_mode = #tpu.pipeline_mode<synchronous>, transform_indices = @transform_7, window_bounds = array<i64: 32, 128>}, {pipeline_mode = #tpu.pipeline_mode<synchronous>, transform_indices = @transform_8, window_bounds = array<i64: 1, 128>}, {pipeline_mode = #tpu.pipeline_mode<synchronous>, transform_indices = @transform_9, window_bounds = array<i64: 128, 32>}, {pipeline_mode = #tpu.pipeline_mode<synchronous>, transform_indices = @transform_10, window_bounds = array<i64: 1, 32>}, {pipeline_mode = #tpu.pipeline_mode<synchronous>, transform_indices = @transform_11, window_bounds = array<i64: 1, 32>}, {pipeline_mode = #tpu.pipeline_mode<synchronous>, transform_indices = @transform_12, window_bounds = array<i64: 1, 32>}, {transform_indices = @transform_13, window_bounds = array<i64: 1, 8, 32>}]} {
    %c0 = arith.constant 0 : index
    %c0_0 = arith.constant 0 : index
    %c0_1 = arith.constant 0 : index
    %0 = vector.load %arg1[%c0, %c0_0, %c0_1] : memref<1x8x32xf32, #tpu.memory_space<vmem>>, vector<1x8x32xf32>
    %1 = vector.shape_cast %0 : vector<1x8x32xf32> to vector<8x32xf32>
    %c0_2 = arith.constant 0 : index
    %c0_3 = arith.constant 0 : index
    %2 = vector.load %arg12[%c0_2, %c0_3] : memref<1x32xf32, #tpu.memory_space<vmem>>, vector<1x32xf32>
    %3 = arith.mulf %1, %1 : vector<8x32xf32>
    %cst = arith.constant dense<0.000000e+00> : vector<8xf32>
    %4 = vector.multi_reduction <add>, %3, %cst [1] : vector<8x32xf32> to vector<8xf32>
    %5 = vector.shape_cast %4 : vector<8xf32> to vector<8x1xf32>
    %6 = math.sqrt %5 : vector<8x1xf32>
    %cst_4 = arith.constant 0.176776692 : f32
    %7 = vector.broadcast %cst_4 : f32 to vector<8x1xf32>
    %8 = arith.mulf %6, %7 : vector<8x1xf32>
    %cst_5 = arith.constant 9.99999993E-9 : f32
    %9 = vector.broadcast %cst_5 : f32 to vector<8x1xf32>
    %10 = arith.addf %8, %9 : vector<8x1xf32>
    %11 = vector.broadcast %10 : vector<8x1xf32> to vector<8x32xf32>
    %12 = arith.divf %1, %11 : vector<8x32xf32>
    %13 = vector.broadcast %2 : vector<1x32xf32> to vector<8x32xf32>
    %14 = arith.mulf %13, %12 : vector<8x32xf32>
    %15 = arith.truncf %14 : vector<8x32xf32> to vector<8x32xbf16>
    %c0_6 = arith.constant 0 : index
    %c0_7 = arith.constant 0 : index
    %16 = vector.load %arg3[%c0_6, %c0_7] : memref<32x32xbf16, #tpu.memory_space<vmem>>, vector<32x32xbf16>
    %cst_8 = arith.constant dense<0.000000e+00> : vector<32x8xf32>
    %17 = tpu.matmul %16, %15, %cst_8 {dimension_numbers = #tpu.dot_dimension_numbers<[1], [1], [0], [0], [0, 0, 1, 0], [], []>} : vector<32x32xbf16>, vector<8x32xbf16>, vector<32x8xf32> -> vector<32x8xf32>
    %18 = vector.shape_cast %17 : vector<32x8xf32> to vector<4x8x8xf32>
    %c0_9 = arith.constant 0 : index
    %c0_10 = arith.constant 0 : index
    %19 = vector.load %arg4[%c0_9, %c0_10] : memref<32x32xbf16, #tpu.memory_space<vmem>>, vector<32x32xbf16>
    %cst_11 = arith.constant dense<0.000000e+00> : vector<32x8xf32>
    %20 = tpu.matmul %19, %15, %cst_11 {dimension_numbers = #tpu.dot_dimension_numbers<[1], [1], [0], [0], [0, 0, 1, 0], [], []>} : vector<32x32xbf16>, vector<8x32xbf16>, vector<32x8xf32> -> vector<32x8xf32>
    %21 = vector.shape_cast %20 : vector<32x8xf32> to vector<4x8x8xf32>
    %c0_12 = arith.constant 0 : index
    %c0_13 = arith.constant 0 : index
    %22 = vector.load %arg5[%c0_12, %c0_13] : memref<32x32xbf16, #tpu.memory_space<vmem>>, vector<32x32xbf16>
    %cst_14 = arith.constant dense<0.000000e+00> : vector<32x8xf32>
    %23 = tpu.matmul %22, %15, %cst_14 {dimension_numbers = #tpu.dot_dimension_numbers<[1], [1], [0], [0], [0, 0, 1, 0], [], []>} : vector<32x32xbf16>, vector<8x32xbf16>, vector<32x8xf32> -> vector<32x8xf32>
    %24 = vector.shape_cast %23 : vector<32x8xf32> to vector<4x8x8xf32>
    %25 = arith.truncf %18 : vector<4x8x8xf32> to vector<4x8x8xbf16>
    %26 = arith.truncf %21 : vector<4x8x8xf32> to vector<4x8x8xbf16>
    "tpu.trace_start"() <{level = 10 : i32, message = "hdq,hdk->hqk"}> : () -> ()
    %cst_15 = arith.constant dense<0.000000e+00> : vector<4x8x8xf32>
    %27 = tpu.matmul %25, %26, %cst_15 {dimension_numbers = #tpu.dot_dimension_numbers<[1], [1], [2], [2], [0, 0, 0, 2, 1, 2], [0], [0]>} : vector<4x8x8xbf16>, vector<4x8x8xbf16>, vector<4x8x8xf32> -> vector<4x8x8xf32>
    "tpu.trace_stop"() : () -> ()
    %c0_16 = arith.constant 0 : index
    %c0_17 = arith.constant 0 : index
    %c0_18 = arith.constant 0 : index
    %28 = vector.load %arg2[%c0_16, %c0_17, %c0_18] : memref<1x1x8xf32, #tpu.memory_space<vmem>>, vector<1x1x8xf32>
    %29 = vector.shape_cast %28 : vector<1x1x8xf32> to vector<1x8xf32>
    %30 = vector.shape_cast %29 : vector<1x8xf32> to vector<1x1x8xf32>
    %31 = vector.broadcast %30 : vector<1x1x8xf32> to vector<4x8x8xf32>
    %32 = arith.addf %27, %31 : vector<4x8x8xf32>
    %cst_19 = arith.constant dense<0xFF800000> : vector<4x8xf32>
    %33 = vector.multi_reduction <maximumf>, %32, %cst_19 [2] : vector<4x8x8xf32> to vector<4x8xf32>
    %34 = vector.shape_cast %33 : vector<4x8xf32> to vector<4x8x1xf32>
    %35 = vector.broadcast %34 : vector<4x8x1xf32> to vector<4x8x8xf32>
    %36 = arith.subf %32, %35 : vector<4x8x8xf32>
    %37 = math.exp %36 : vector<4x8x8xf32>
    %cst_20 = arith.constant dense<0.000000e+00> : vector<4x8xf32>
    %38 = vector.multi_reduction <add>, %37, %cst_20 [2] : vector<4x8x8xf32> to vector<4x8xf32>
    %39 = vector.shape_cast %38 : vector<4x8xf32> to vector<4x8x1xf32>
    %40 = tpu.reciprocal %39 {approx = true} : vector<4x8x1xf32> -> vector<4x8x1xf32>
    %41 = vector.broadcast %40 : vector<4x8x1xf32> to vector<4x8x8xf32>
    %42 = arith.mulf %37, %41 : vector<4x8x8xf32>
    %43 = arith.truncf %42 : vector<4x8x8xf32> to vector<4x8x8xbf16>
    %44 = arith.truncf %24 : vector<4x8x8xf32> to vector<4x8x8xbf16>
    "tpu.trace_start"() <{level = 10 : i32, message = "hdk,hqk->hdq"}> : () -> ()
    %cst_21 = arith.constant dense<0.000000e+00> : vector<4x8x8xf32>
    %45 = tpu.matmul %44, %43, %cst_21 {dimension_numbers = #tpu.dot_dimension_numbers<[2], [2], [1], [1], [0, 0, 0, 1, 1, 1], [0], [0]>} : vector<4x8x8xbf16>, vector<4x8x8xbf16>, vector<4x8x8xf32> -> vector<4x8x8xf32>
    "tpu.trace_stop"() : () -> ()
    %46 = vector.shape_cast %45 : vector<4x8x8xf32> to vector<32x8xf32>
    %47 = arith.truncf %46 : vector<32x8xf32> to vector<32x8xbf16>
    %c0_22 = arith.constant 0 : index
    %c0_23 = arith.constant 0 : index
    %48 = vector.load %arg6[%c0_22, %c0_23] : memref<32x32xbf16, #tpu.memory_space<vmem>>, vector<32x32xbf16>
    %cst_24 = arith.constant dense<0.000000e+00> : vector<8x32xf32>
    %49 = tpu.matmul %47, %48, %cst_24 {dimension_numbers = #tpu.dot_dimension_numbers<[0], [0], [1], [1], [0, 1, 1, 1], [], []>} : vector<32x8xbf16>, vector<32x32xbf16>, vector<8x32xf32> -> vector<8x32xf32>
    %c0_25 = arith.constant 0 : index
    %c0_26 = arith.constant 0 : index
    %50 = vector.load %arg7[%c0_25, %c0_26] : memref<1x32xf32, #tpu.memory_space<vmem>>, vector<1x32xf32>
    %51 = vector.broadcast %50 : vector<1x32xf32> to vector<8x32xf32>
    %52 = arith.addf %49, %51 : vector<8x32xf32>
    %53 = arith.addf %14, %52 : vector<8x32xf32>
    %c0_27 = arith.constant 0 : index
    %c0_28 = arith.constant 0 : index
    %54 = vector.load %arg13[%c0_27, %c0_28] : memref<1x32xf32, #tpu.memory_space<vmem>>, vector<1x32xf32>
    %55 = arith.mulf %53, %53 : vector<8x32xf32>
    %cst_29 = arith.constant dense<0.000000e+00> : vector<8xf32>
    %56 = vector.multi_reduction <add>, %55, %cst_29 [1] : vector<8x32xf32> to vector<8xf32>
    %57 = vector.shape_cast %56 : vector<8xf32> to vector<8x1xf32>
    %58 = math.sqrt %57 : vector<8x1xf32>
    %cst_30 = arith.constant 0.176776692 : f32
    %59 = vector.broadcast %cst_30 : f32 to vector<8x1xf32>
    %60 = arith.mulf %58, %59 : vector<8x1xf32>
    %cst_31 = arith.constant 9.99999993E-9 : f32
    %61 = vector.broadcast %cst_31 : f32 to vector<8x1xf32>
    %62 = arith.addf %60, %61 : vector<8x1xf32>
    %63 = vector.broadcast %62 : vector<8x1xf32> to vector<8x32xf32>
    %64 = arith.divf %53, %63 : vector<8x32xf32>
    %65 = vector.broadcast %54 : vector<1x32xf32> to vector<8x32xf32>
    %66 = arith.mulf %65, %64 : vector<8x32xf32>
    %67 = arith.truncf %66 : vector<8x32xf32> to vector<8x32xbf16>
    %c0_32 = arith.constant 0 : index
    %c0_33 = arith.constant 0 : index
    %68 = vector.load %arg8[%c0_32, %c0_33] : memref<32x128xbf16, #tpu.memory_space<vmem>>, vector<32x128xbf16>
    %cst_34 = arith.constant dense<0.000000e+00> : vector<8x128xf32>
    %69 = tpu.matmul %67, %68, %cst_34 {dimension_numbers = #tpu.dot_dimension_numbers<[1], [0], [0], [1], [0, 0, 1, 1], [], []>} : vector<8x32xbf16>, vector<32x128xbf16>, vector<8x128xf32> -> vector<8x128xf32>
    %c0_35 = arith.constant 0 : index
    %c0_36 = arith.constant 0 : index
    %70 = vector.load %arg9[%c0_35, %c0_36] : memref<1x128xf32, #tpu.memory_space<vmem>>, vector<1x128xf32>
    %71 = vector.broadcast %70 : vector<1x128xf32> to vector<8x128xf32>
    %72 = arith.addf %69, %71 : vector<8x128xf32>
    %cst_37 = arith.constant 5.000000e-01 : f32
    %73 = vector.broadcast %cst_37 : f32 to vector<8x128xf32>
    %74 = arith.mulf %73, %72 : vector<8x128xf32>
    %cst_38 = arith.constant 0.707106769 : f32
    %75 = vector.broadcast %cst_38 : f32 to vector<8x128xf32>
    %76 = arith.mulf %72, %75 : vector<8x128xf32>
    %77 = math.erf %76 : vector<8x128xf32>
    %cst_39 = arith.constant 1.000000e+00 : f32
    %78 = vector.broadcast %cst_39 : f32 to vector<8x128xf32>
    %79 = arith.addf %78, %77 : vector<8x128xf32>
    %80 = arith.mulf %74, %79 : vector<8x128xf32>
    %81 = arith.truncf %80 : vector<8x128xf32> to vector<8x128xbf16>
    %c0_40 = arith.constant 0 : index
    %c0_41 = arith.constant 0 : index
    %82 = vector.load %arg10[%c0_40, %c0_41] : memref<128x32xbf16, #tpu.memory_space<vmem>>, vector<128x32xbf16>
    %cst_42 = arith.constant dense<0.000000e+00> : vector<8x32xf32>
    %83 = tpu.matmul %81, %82, %cst_42 {dimension_numbers = #tpu.dot_dimension_numbers<[1], [0], [0], [1], [0, 0, 1, 1], [], []>} : vector<8x128xbf16>, vector<128x32xbf16>, vector<8x32xf32> -> vector<8x32xf32>
    %c0_43 = arith.constant 0 : index
    %c0_44 = arith.constant 0 : index
    %84 = vector.load %arg11[%c0_43, %c0_44] : memref<1x32xf32, #tpu.memory_space<vmem>>, vector<1x32xf32>
    %85 = vector.broadcast %84 : vector<1x32xf32> to vector<8x32xf32>
    %86 = arith.addf %83, %85 : vector<8x32xf32>
    %87 = arith.addf %66, %86 : vector<8x32xf32>
    %c0_45 = arith.constant 0 : index
    %c0_46 = arith.constant 0 : index
    %c0_47 = arith.constant 0 : index
    %88 = vector.load %arg14[%c0_45, %c0_46, %c0_47] : memref<1x8x32xf32, #tpu.memory_space<vmem>>, vector<1x8x32xf32>
    %89 = vector.shape_cast %88 : vector<1x8x32xf32> to vector<8x32xf32>
    %90 = vector.shape_cast %87 : vector<8x32xf32> to vector<1x8x32xf32>
    tpu.vector_store %arg14[%c0_45, %c0_46, %c0_47], %90 {strides = array<i32>} : memref<1x8x32xf32, #tpu.memory_space<vmem>>, vector<1x8x32xf32>,
    return
  }
  func.func @transform_0(%arg0: i32) -> (i32, i32, i32) {
    %c0_i32 = arith.constant 0 : i32
    %c0_i32_0 = arith.constant 0 : i32
    %c0_i32_1 = arith.constant 0 : i32
    return %arg0, %c0_i32, %c0_i32_0 : i32, i32, i32
  }
  func.func @transform_1(%arg0: i32) -> (i32, i32, i32) {
    %c0_i32 = arith.constant 0 : i32
    %c0_i32_0 = arith.constant 0 : i32
    %c0_i32_1 = arith.constant 0 : i32
    return %arg0, %c0_i32, %c0_i32_0 : i32, i32, i32
  }
  func.func @transform_2(%arg0: i32) -> (i32, i32) {
    %c0_i32 = arith.constant 0 : i32
    %c0_i32_0 = arith.constant 0 : i32
    %c0_i32_1 = arith.constant 0 : i32
    return %c0_i32, %c0_i32_0 : i32, i32
  }
  func.func @transform_3(%arg0: i32) -> (i32, i32) {
    %c0_i32 = arith.constant 0 : i32
    %c0_i32_0 = arith.constant 0 : i32
    %c0_i32_1 = arith.constant 0 : i32
    return %c0_i32, %c0_i32_0 : i32, i32
  }
  func.func @transform_4(%arg0: i32) -> (i32, i32) {
    %c0_i32 = arith.constant 0 : i32
    %c0_i32_0 = arith.constant 0 : i32
    %c0_i32_1 = arith.constant 0 : i32
    return %c0_i32, %c0_i32_0 : i32, i32
  }
  func.func @transform_5(%arg0: i32) -> (i32, i32) {
    %c0_i32 = arith.constant 0 : i32
    %c0_i32_0 = arith.constant 0 : i32
    %c0_i32_1 = arith.constant 0 : i32
    return %c0_i32, %c0_i32_0 : i32, i32
  }
  func.func @transform_6(%arg0: i32) -> (i32, i32) {
    %c0_i32 = arith.constant 0 : i32
    %c0_i32_0 = arith.constant 0 : i32
    %c0_i32_1 = arith.constant 0 : i32
    return %c0_i32, %c0_i32_0 : i32, i32
  }
  func.func @transform_7(%arg0: i32) -> (i32, i32) {
    %c0_i32 = arith.constant 0 : i32
    %c0_i32_0 = arith.constant 0 : i32
    %c0_i32_1 = arith.constant 0 : i32
    return %c0_i32, %c0_i32_0 : i32, i32
  }
  func.func @transform_8(%arg0: i32) -> (i32, i32) {
    %c0_i32 = arith.constant 0 : i32
    %c0_i32_0 = arith.constant 0 : i32
    %c0_i32_1 = arith.constant 0 : i32
    return %c0_i32, %c0_i32_0 : i32, i32
  }
  func.func @transform_9(%arg0: i32) -> (i32, i32) {
    %c0_i32 = arith.constant 0 : i32
    %c0_i32_0 = arith.constant 0 : i32
    %c0_i32_1 = arith.constant 0 : i32
    return %c0_i32, %c0_i32_0 : i32, i32
  }
  func.func @transform_10(%arg0: i32) -> (i32, i32) {
    %c0_i32 = arith.constant 0 : i32
    %c0_i32_0 = arith.constant 0 : i32
    %c0_i32_1 = arith.constant 0 : i32
    return %c0_i32, %c0_i32_0 : i32, i32
  }
  func.func @transform_11(%arg0: i32) -> (i32, i32) {
    %c0_i32 = arith.constant 0 : i32
    %c0_i32_0 = arith.constant 0 : i32
    %c0_i32_1 = arith.constant 0 : i32
    return %c0_i32, %c0_i32_0 : i32, i32
  }
  func.func @transform_12(%arg0: i32) -> (i32, i32) {
    %c0_i32 = arith.constant 0 : i32
    %c0_i32_0 = arith.constant 0 : i32
    %c0_i32_1 = arith.constant 0 : i32
    return %c0_i32, %c0_i32_0 : i32, i32
  }
  func.func @transform_13(%arg0: i32) -> (i32, i32, i32) {
    %c0_i32 = arith.constant 0 : i32
    %c0_i32_0 = arith.constant 0 : i32
    %c0_i32_1 = arith.constant 0 : i32
    return %arg0, %c0_i32, %c0_i32_0 : i32, i32, i32
  }
}

</mosaic_0001>

<bundles_post_ra>
// kernel: tpu_custom_call.1
= control target key start
LH: loop header
LB: loop body
LE: loop exit
PB: predicated region body
PF: predicated region fallthrough
CT: control target
= control target key end

     0   :  { %s2614_s0 = inlined_call_operand.vmem [shape: f32[2,8,32], index: 0, kind: input, shape index: {}]   ;;  %s2615_s1 = inlined_call_operand.hbm [shape: f32[2,1,8], index: 1, kind: input, shape index: {}]   ;;  %s2616_s2 = inlined_call_operand.vmem [shape: bf16[32,32], index: 2, kind: input, shape index: {}]   ;;  %s2617_s3 = inlined_call_operand.vmem [shape: bf16[32,32], index: 3, kind: input, shape index: {}]   ;;  %s2618_s4 = inlined_call_operand.vmem [shape: bf16[32,32], index: 4, kind: input, shape index: {}]   ;;  %s2619_s5 = inlined_call_operand.vmem [shape: bf16[32,32], index: 5, kind: input, shape index: {}]   ;;  %s2620_s6 = inlined_call_operand.hbm [shape: f32[1,32], index: 6, kind: input, shape index: {}]   ;;  %s2621_s7 = inlined_call_operand.hbm [shape: bf16[32,128], index: 7, kind: input, shape index: {}]   ;;  %s2622_s8 = inlined_call_operand.hbm [shape: f32[1,128], index: 8, kind: input, shape index: {}]   ;;  %s2623_s9 = inlined_call_operand.vmem [shape: bf16[128,32], index: 9, kind: input, shape index: {}]   ;;  %s2624_s10 = inlined_call_operand.vmem [shape: f32[1,32], index: 10, kind: input, shape index: {}]   ;;  %s2625_s11 = inlined_call_operand.vmem [shape: f32[1,32], index: 11, kind: input, shape index: {}]   ;;  %s2626_s12 = inlined_call_operand.vmem [shape: f32[1,32], index: 12, kind: input, shape index: {}]   ;;  %s2627_s13 = inlined_call_operand.hbm [shape: f32[2,8,32], index: 13, kind: output, shape index: {}]  }
   0x1   :  { %2637 = sst [smem:[#allocation20_spill]] %s2620_s6 }
   0x2   :  { %2638 = sst [smem:[#allocation21_spill]] %s2621_s7 }
   0x3   :  { %2639 = sst [smem:[#allocation22_spill]] %s2622_s8 }
   0x4   :  { %18 = vsyncpa [#allocation3], 0 }
   0x5   :  { %20 = vsyncpa [#allocation3 + $0x1], 0 }
   0x6   :  { %21 = vsyncpa [#allocation6], 0 }
   0x7   :  { %22 = vsyncpa [#allocation9], 0 }
   0x8   :  { %23 = vsyncpa [#allocation4], 0 }
   0x9   :  { %25 = vsyncpa [#allocation4 + $0x1], 0  ;;  %s2251_s25 = smov 0   ;;  %s2253_s26 = smov 0  }
   0xa   :  { %s2255_s27 = smov 0   ;;  %s2257_s28 = smov 0  }
   0xb LB: > { %2640 = sst [smem:[#allocation15_spill]] %s2166_s27  ;;  %s2272_s29 = sadd.s32 4294967295, %s2170_s28   ;;  %s2170_s28 = sphi %s2257_s28, %s2665_s28   ;;  %s2166_s27 = sphi %s2255_s27, %s2667_s27   ;;  %s2162_s26 = sphi %s2253_s26, %s2669_s26   ;;  %s2158_s25 = sphi %s2251_s25, %s2668_s25  }
   0xc   : > { %2641 = sst [smem:[#allocation16_spill]] %s2170_s28  ;;  %s1664_s30 = sadd.s32 4294967294, %s2170_s28  }
   0xd   : > { %p77_p0 = scmp.ne.s32.totalorder %s2162_s26, %s2158_s25  ;;  %p2628_p1 = scmp.eq.s32.totalorder %s2272_s29, 0 }
   0xe   : > { %p332_p2 = scmp.eq.s32.totalorder %s2272_s29, 1  ;;  %p338_p3 = scmp.eq.s32.totalorder %s1664_s30, 1 }
   0xf   : > { %p2281_p4 = por %p2628_p1, %p77_p0  ;;  %p1665_p5 = scmp.ge.s32.totalorder %s2170_s28, 1 }
  0x10   : > { %p2286_p6 = por %p338_p3, %p77_p0  ;;  %p345_p7 = scmp.lt.s32.totalorder %s2170_s28, 3 }
  0x11   : > { %s2642_s14 = scalar_select %p2281_p4, 1, 0 }
  0x12   : > { %s2643_s15 = scalar_select %p2286_p6, 1, 0 }
  0x13   : > { %p2291_p8 = pnand %p1665_p5, %p345_p7  ;;  %s2172_s17 = smov [#allocation5]  }
  0x14   : > { %2644 = sst [smem:[#allocation17_spill]] %s2643_s15  ;;  %s370_s18 = sshll.u32 %s2172_s17, 4  ;;  %s371_s18 = int_to_ptr.vmem [resolvable:$true] %s370_s18 }
  0x15   : > { %s2645_s16 = scalar_select %p2291_p8, 1, 0 }
  0x16   : > { %p1882_p10 = pneg %p2291_p8  ;;  %s2173_s19 = smov [#allocation7]  }
  0x17   : > { %s380_s20 = sshll.u32 %s2173_s19, 4  ;;  %s2174_s22 = smov [#allocation8]   ;;  %s2304_s20 = int_to_ptr.vmem [resolvable:$true] %s380_s20 }
  0x18   : > { %p2300_p11 = pnand %p1882_p10, %p2628_p1  ;;  %s394_s23 = sshll.u32 %s2174_s22, 4  ;;  %s395_s23 = int_to_ptr.vmem [resolvable:$true] %s394_s23 }
  0x19   : > { %s2003_s24 = scalar_lea.vmem %s371_s18, 16  ;;  %s2010_s30 = scalar_lea.vmem %s371_s18, 32 }
  0x1a   : > { %p1994_p12 = pneg %p2300_p11  ;;  %p2004_p13 = scmp.ne.s32.totalorder %s371_s18, %s2003_s24 }
  0x1b   : > { %p2011_p5 = scmp.lt.s32.totalorder %s371_s18, %s371_s18  ;;  %p2012_p7 = scmp.lt.s32.totalorder %s2010_s30, %s2003_s24 }
  0x1c   : > { %p2006_p0 = pnand %p2004_p13, %p1994_p12 }
  0x1d   : > { %p2013_p10 = por %p2012_p7, %p2011_p5 }
  0x1e   : > { %p2007_p3 = pneg %p2006_p0 }
  0x20   : > { %p2014_p9 = pnand %p2013_p10, %p2007_p3 }
  0x22   : > { %2017 = shalt.err (!%p2014_p9)
}
  0x23   : > { %s2647_s6 = sld [smem:[#allocation20_spill]]  ;;  %s2029_s22 = scalar_lea.vmem %s2304_s20, 256 }
  0x24   : > { %p2030_p1 = scmp.ne.s32.totalorder %s2304_s20, %s2029_s22  ;;  %p2037_p5 = scmp.lt.s32.totalorder %s2304_s20, %s2304_s20 }
  0x25   : > { %p2038_p3 = scmp.lt.s32.totalorder %s2029_s22, %s2029_s22 }
  0x26   : > { %p2032_p13 = pnand %p2030_p1, %p1994_p12 }
  0x27   : > { %p2039_p9 = por %p2038_p3, %p2037_p5 }
  0x28   : > { %p2033_p0 = pneg %p2032_p13 }
  0x29   : > { %1885 = dma.hbm_to_vmem [thread:$0]  (!%p2300_p11), %s2647_s6, 16, %s371_s18, [#allocation6]  }
  0x2a   : > { %p2040_p7 = pnand %p2039_p9, %p2033_p0 }
  0x2c   : > { %2043 = shalt.err (!%p2040_p7)
}
  0x2d   : > { %s2175_s24 = smov 64   ;;  %s2176_s30 = smov 4  }
  0x2e   : > { %s2648_s7 = sld [smem:[#allocation21_spill]]  ;;  %s2055_s19 = scalar_lea.vmem %s395_s23, 16 }
  0x2f   : > { %p2056_p1 = scmp.ne.s32.totalorder %s395_s23, %s2055_s19  ;;  %s2062_s22 = scalar_lea.vmem %s395_s23, 32 }
  0x30   : > { %p2063_p0 = scmp.lt.s32.totalorder %s395_s23, %s395_s23  ;;  %p2064_p5 = scmp.lt.s32.totalorder %s2062_s22, %s2055_s19 }
  0x31   : > { %p2058_p10 = pnand %p2056_p1, %p1994_p12 }
  0x32   : > { %p2065_p3 = por %p2064_p5, %p2063_p0 }
  0x33   : > { %p2059_p13 = pneg %p2058_p10 }
  0x34   : > { %1888 = dma.hbm_to_vmem [thread:$0]  (!%p2300_p11), %s2648_s7, 256, %s2304_s20, [#allocation6], %s2175_s24, %s2175_s24, %s2176_s30  }
  0x35   : > { %p2066_p9 = pnand %p2065_p3, %p2059_p13 }
  0x37   : > { %2069 = shalt.err (!%p2066_p9)
}
  0x38   : > { %s2649_s8 = sld [smem:[#allocation22_spill]]  ;;  %s2338_s20 = sadd.s32 1, %s2170_s28  }
  0x39   : > { %2650 = sst [smem:[#allocation18_spill]] %s2338_s20  ;;  %s61_s24 = ssub.s32 %s2170_s28, %s2338_s20 }
  0x3a   : > { %s64_s21 = sadd.s32 1, %s2166_s27  ;;  %p62_p12 = scmp.eq.s32.totalorder %s61_s24, 0 }
  0x3b   : > { %p71_p7 = scmp.ne.s32.totalorder %s2166_s27, %s2162_s26  ;;  %p72_p1 = scmp.eq.s32.totalorder %s2170_s28, 0 }
  0x3c   : > { %p1903_p10 = scmp.lt.s32.totalorder %s2170_s28, 2  ;;  %s424_s30 = sand.u32 1, %s2166_s27  }
  0x3d   : > { %s2348_s6 = scalar_select %p62_p12, %s2166_s27, %s64_s21  }
  0x3e   : > { %1891 = dma.hbm_to_vmem [thread:$0]  (!%p2300_p11), %s2649_s8, 16, %s395_s23, [#allocation9]  }
  0x3f   : > { %2651 = sst [smem:[#allocation19_spill]] %s2348_s6  ;;  %p73_p13 = por %p72_p1, %p71_p7 }
  0x40   : > { %p2352_p0 = por %p332_p2, %p71_p7  ;;  %s1670_s17 = sshll.u32 %s2170_s28, 4 }
  0x41   : > { %s2361_s19 = scalar_lea.hbm %s2615_s1, %s1670_s17  ;;  %s427_s22 = scalar_lea.vmem [#allocation2], %s424_s30 }
  0x42   : > { %s2652_s15 = scalar_select %p2352_p0, 1, 0 }
  0x43   : > { %s434_s24 = sshll.u32 %s427_s22, 4  ;;  %p2363_p11 = pnand %p1903_p10, %p73_p13  ;;  %s435_s24 = int_to_ptr.vmem [resolvable:$true] %s434_s24 }
  0x44   : > { %s425_s7 = scalar_lea.sflag [#allocation3], %s424_s30  ;;  %s2070_s8 = scalar_lea.hbm %s2361_s19, 16 }
  0x45   : > { %p2071_p2 = scmp.ne.s32.totalorder %s2361_s19, %s2070_s8  ;;  %p2072_p5 = pneg %p2363_p11 }
  0x46   : > { %s2075_s18 = scalar_lea.hbm %s2615_s1, 32  ;;  %p2076_p12 = scmp.lt.s32.totalorder %s2361_s19, %s2615_s1 }
  0x47   : > { %p2073_p3 = pnand %p2072_p5, %p2071_p2  ;;  %p2077_p7 = scmp.lt.s32.totalorder %s2075_s18, %s2070_s8 }
  0x49   : > { %p2074_p9 = pneg %p2073_p3  ;;  %p2078_p1 = por %p2077_p7, %p2076_p12 }
  0x4b   : > { %p2079_p10 = pnand %p2078_p1, %p2074_p9 }
  0x4d   : > { %2082 = shalt.err (!%p2079_p10)
}
  0x4e   : > { %s2083_s22 = scalar_lea.vmem %s435_s24, 16  ;;  %s2177_s30 = smov [#allocation2]  }
  0x4f   : > { %p2084_p13 = scmp.ne.s32.totalorder %s435_s24, %s2083_s22  ;;  %s2088_s20 = sshll.u32 %s2177_s30, 4  ;;  %s2089_s20 = int_to_ptr.vmem [resolvable:$false] %s2088_s20 }
  0x50   : > { %s2090_s28 = scalar_lea.vmem %s2089_s20, 32  ;;  %p2091_p2 = scmp.lt.s32.totalorder %s435_s24, %s2089_s20 }
  0x51   : > { %p2086_p6 = pnand %p2084_p13, %p2072_p5  ;;  %p2092_p3 = scmp.lt.s32.totalorder %s2090_s28, %s2083_s22 }
  0x53   : > { %p2087_p0 = pneg %p2086_p6  ;;  %p2093_p4 = por %p2092_p3, %p2091_p2 }
  0x55   : > { %p2094_p8 = pnand %p2093_p4, %p2087_p0 }
  0x57   : > { %2097 = shalt.err (!%p2094_p8)
}
  0x58   : > { %1895 = dma.hbm_to_vmem [thread:$0]  (!%p2363_p11), %s2361_s19, 16, %s435_s24, %s425_s7  }
  0x59   : > { %p2654_p9 = scmp.ne.s32.totalorder %s2645_s16, 0 }
  0x5a   : > { %s2384_s8 = sand.u32 (!%p2654_p9), 1, %s2162_s26   ;;  %p2655_p6 = scmp.ne.s32.totalorder (!%p2654_p9), %s2642_s14, 0 }
  0x5b   : > { %443 = sbr.rel (%p2654_p9) target bundleno = 2224 (0x8b0), region = 72  ;;  %s446_s27 = scalar_lea.sflag (!%p2654_p9), [#allocation3], %s2384_s8 }
  0x5c   : > { %s448_s6 = scalar_lea.vmem (!%p2654_p9), [#allocation2], %s2384_s8 }
  0x60   : > { %2141 = dma.done.wait (%p2655_p6), %s446_s27, 16  }
  0x61   : > { %2143 = vsyncadd (%p2655_p6), %s446_s27, 4294967280  ;;  %p2656_p4 = scmp.eq.s32.totalorder %s2272_s29, 0 }
  0x63   : > { %2145 = dma.done.wait (%p2656_p4), [#allocation6], 272   ;;  %p2657_p8 = pmov %p2656_p4 }
  0x64   : > { %p2658_p0 = pmov %p2656_p4 }
  0x65   : > { %2147 = vsyncadd (%p2657_p8), [#allocation6], 4294967024 }
  0x66   : > { %2149 = dma.done.wait (%p2658_p0), [#allocation9], 16   ;;  %p2659_p11 = pmov %p2658_p0 }
  0x67   : > { %p506_p5 = scmp.lt.s32.totalorder %s2272_s29, 1  ;;  %vm514_vm0 = vcmask 261120   ;;  %v1948_v3 = vld [vmem:[%s2616_s2] sm:$0xff]   ;;  %v1949_v18 = vld [vmem:[%s2616_s2 + $0x8] sm:$0xff]   ;;  %v2178_v23 = vmov 0.0   ;;  %vm2179_vm3 = vmmov 0  }
  0x68   : > { %2151 = vsyncadd (%p2659_p11), [#allocation9], 4294967280  ;;  %1763 = vmatprep.mubr.msk.bf16.mxu0 %vm514_vm0, %v1948_v3  ;;  %v1677_v13 = vld [vmem:[%s2625_s11] ss:$0 sm:$0xff]  ;;  %v1951_v20 = vld [vmem:[%s2617_s3 + $0x8] sm:$0xff]   ;;  %1779 = vmatprep.subr.bf16.mxu1 %v2178_v23  ;;  %vm782_vm4 = vcmask 1043456  }
  0x69   : > { %s507_s7 = scalar_select %p506_p5, %s2272_s29, 1  ;;  %v1950_v19 = vld [vmem:[%s2617_s3] sm:$0xff]   ;;  %v1953_v22 = vld [vmem:[%s2618_s4 + $0x8] sm:$0xff]   ;;  %1781 = vmatprep.mubr.msk.bf16.mxu1 %vm2179_vm3, %v2178_v23  ;;  %vm778_vm5 = vcmask 64512  }
  0x6a   : > { %v1952_v21 = vld [vmem:[%s2618_s4] sm:$0xff]   ;;  %s1675_s22 = sshll.u32 %s2384_s8, 3  ;;  %p2660_p7 = scmp.ne.s32.totalorder %s2652_s15, 0 }
  0x6b   : > { %s1676_s28 = sshll.u32 %s507_s7, 3  ;;  %v1690_v51 = vld [vmem:[%s448_s6] ss:$0 sm:$0xff]  ;;  %s1718_s7 = sshll.u32 %s2272_s29, 7 }
  0x6c   : > { %s509_s20 = scalar_lea.vmem %s2614_s0, %s1676_s28  ;;  %s505_s28 = scalar_lea.vmem [#allocation10], %s1675_s22 }
  0x6d   : > { %v511_v0 = vld [vmem:[%s509_s20] sm:$0xff]  ;;  %s1556_s16 = sshll.u32 %s505_s28, 4  ;;  %s2570_s6 = scalar_lea.hbm %s2627_s13, %s1718_s7  ;;  %s2572_s16 = int_to_ptr.vmem [resolvable:$true] %s1556_s16 }
  0x6e   : > { %v513_v1 = vmul.f32 %v511_v0, %v511_v0  ;;  %s1543_s29 = scalar_lea.sflag [#allocation4], %s2384_s8  ;;  %s2098_s19 = scalar_lea.vmem %s2572_s16, 128 }
  0x6f   : > { %p2099_p12 = scmp.ne.s32.totalorder %s2572_s16, %s2098_s19  ;;  %s2180_s24 = smov [#allocation10]  }
  0x70   : > { %v515_v2 = vsel %vm514_vm0, %v513_v1, 0.0  ;;  %s2102_s21 = sshll.u32 %s2180_s24, 4  ;;  %s2103_s21 = int_to_ptr.vmem [resolvable:$false] %s2102_s21 }
  0x71   : > { %516 = vadd.xlane.f32.xlu0 %v515_v2  ;;  %p2100_p1 = pnand %p2099_p12, %p2660_p7  ;;  %s2104_s17 = scalar_lea.vmem %s2103_s21, 256 }
  0x72   : > { %p2105_p13 = scmp.lt.s32.totalorder %s2572_s16, %s2103_s21  ;;  %p2106_p2 = scmp.lt.s32.totalorder %s2104_s17, %s2098_s19 }
  0x73   : > { %p2101_p10 = pneg %p2100_p1 }
  0x74   : > { %p2107_p3 = por %p2106_p2, %p2105_p13 }
  0x76   : > { %p2108_p9 = pnand %p2107_p3, %p2101_p10 }
  0xfa   : > { %v517_v4 = vpop.xlane.xlu0 %516 }
  0xfb   : > { %1966 = vrsqrt.f32 %v517_v4  ;;  %vm520_vm1 = vcmp.eq.f32.partialorder %v517_v4, inf  ;;  %v523_v7 = vand.u32 2147483648, %v517_v4  ;;  %vm522_vm2 = vcmp.eq.f32.partialorder %v517_v4, 0.0 }
 0x108   : > { %v1967_v5 = vpop.eup %1966 }
 0x109   : > { %v519_v6 = vmul.f32 %v1967_v5, %v517_v4 }
 0x10b   : > { %v521_v8 = vsel %vm520_vm1, %v517_v4, %v519_v6 }
 0x10c   : > { %v524_v9 = vsel %vm522_vm2, %v523_v7, %v521_v8 }
 0x10d   : > { %v525_v10 = vmul.f32 0.17677669, %v524_v9 }
 0x10f   : > { %v526_v11 = vadd.f32 1e-08, %v525_v10 }
 0x111   : > { %1968 = vrcp.f32 %v526_v11 }
 0x11e   : > { %v1969_v12 = vpop.eup %1968 }
 0x11f   : > { %v528_v14 = vmul.f32 %v1969_v12, %v511_v0 }
 0x121   : > { %v2413_v15 = vmul.f32 %v1677_v13, %v528_v14 }
 0x123   : > { %v536_v16 = vpack.c.bf16 %v2413_v15, %v2413_v15 }
 0x125   : > { %1863 = vmatprep.subr.msk.bf16.mxu0 %vm514_vm0, %v536_v16  ;;  %v558_v17 = vsel %vm514_vm0, %v536_v16, 0 }
 0x126   : > { %1762 = vmatpush3.bf16.xpose.msra.mxu0 %v558_v17 }
 0x127   : > { %1864 = vmatprep.subr.msk.bf16.mxu0 %vm514_vm0, %v536_v16 }
 0x12d   : > { %1764 = vmatmul.mubr.msk.bf16.vlgmr.msra.gmra.mxu0 %vm514_vm0, %v1949_v18 }
 0x12e   : > { %1768 = vmatpush3.bf16.xpose.msra.mxu0 %v558_v17  ;;  %1769 = vmatprep.mubr.msk.bf16.mxu0 %vm514_vm0, %v1950_v19 }
 0x12f   : > { %1865 = vmatprep.subr.msk.bf16.mxu0 %vm514_vm0, %v536_v16 }
 0x135   : > { %1770 = vmatmul.mubr.msk.bf16.vlgmr.msra.gmra.mxu0 %vm514_vm0, %v1951_v20 }
 0x136   : > { %1774 = vmatpush3.bf16.xpose.msra.mxu0 %v558_v17  ;;  %1775 = vmatprep.mubr.msk.bf16.mxu0 %vm514_vm0, %v1952_v21 }
 0x137   : > { %1785 = vmatprep.subr.bf16.mxu0 %v2178_v23 }
 0x13d   : > { %1776 = vmatmul.mubr.msk.bf16.vlgmr.msra.gmra.mxu0 %vm514_vm0, %v1953_v22 }
 0x13e   : > { %1787 = vmatprep.mubr.msk.bf16.mxu0 %vm2179_vm3, %v2178_v23 }
 0x1ed   : > { %v1765_v24 = vpop.f32.mrf.mxu0 }
 0x1ee   : > { %v749_v33 = vpack.c.bf16 %v1765_v24, %v1765_v24 }
 0x1ef   : > { %v594_v25 = vpop.f32.mrf.mxu0 }
 0x1f0   : > { %v747_v26 = vpack.c.bf16 %v594_v25, %v594_v25 }
 0x1f1   : > { %v1766_v27 = vpop.f32.mrf.mxu0 }
 0x1f2   : > { %762 = vxpose.xlu0.c.b16.start.end [1/1] (short) (narrow) %v747_v26, 16  ;;  %v750_v40 = vpack.c.bf16 %v1766_v27, %v1766_v27 }
 0x1f3   : > { %v597_v28 = vpop.f32.mrf.mxu0 }
 0x1f4   : > { %v748_v29 = vpack.c.bf16 %v597_v28, %v597_v28 }
 0x1f5   : > { %v1771_v30 = vpop.f32.mrf.mxu0 }
 0x1f6   : > { %826 = vxpose.xlu1.c.b16.start.end [1/1] (short) (narrow) %v748_v29, 16  ;;  %v753_v31 = vpack.c.bf16 %v1771_v30, %v1771_v30 }
 0x1f7   : > { %v663_v32 = vpop.f32.mrf.mxu0 }
 0x1f8   : > { %v908_v34 = vsel %vm782_vm4, %v753_v31, 0  ;;  %v751_v35 = vpack.c.bf16 %v663_v32, %v663_v32 }
 0x1f9   : > { %v1772_v36 = vpop.f32.mrf.mxu0 }
 0x1fa   : > { %888 = vxpose.xlu1.c.b16.start.end [1/1] (short) (narrow) %v749_v33, 16  ;;  %v754_v37 = vpack.c.bf16 %v1772_v36, %v1772_v36  ;;  %v784_v38 = vsel %vm782_vm4, %v751_v35, 0 }
 0x1fb   : > { %v666_v39 = vpop.f32.mrf.mxu0  ;;  %1780 = vmatpush3.bf16.msra.mxu1 %v784_v38 }
 0x1fc   : > { %v970_v41 = vsel %vm782_vm4, %v754_v37, 0  ;;  %v752_v42 = vpack.c.bf16 %v666_v39, %v666_v39  ;;  %1791 = vmatprep.subr.bf16.mxu1 %v2178_v23 }
 0x1fd   : > { %v2467_v48 = vpop.f32.mrf.mxu0 }
 0x1fe   : > { %950 = vxpose.xlu1.c.b16.start.end [1/1] (short) (narrow) %v750_v40, 16  ;;  %v846_v43 = vsel %vm782_vm4, %v752_v42, 0 }
 0x1ff   : > { %1786 = vmatpush3.bf16.msra.mxu0 %v846_v43  ;;  %v2469_v49 = vpop.f32.mrf.mxu0 }
 0x200   : > { %1797 = vmatprep.subr.bf16.mxu0 %v2178_v23 }
 0x201   : > { %v2471_v50 = vpop.f32.mrf.mxu0 }
 0x203   : > { %v2475_v54 = vpop.f32.mrf.mxu0 }
 0x254   : > { %v770_v44 = vpop.trf.xlu0 }
 0x255   : > { %1782 = vmatmul.mubr.msk.bf16.vlgmr.msra.gmra.mxu1 %vm778_vm5, %v770_v44 }
 0x256   : > { %1792 = vmatpush3.bf16.msra.mxu1 %v908_v34  ;;  %1793 = vmatprep.mubr.msk.bf16.mxu1 %vm2179_vm3, %v2178_v23 }
 0x257   : > { %1803 = vmatprep.subr.bf16.mxu1 %v2178_v23 }
 0x258   : > { %v834_v45 = vpop.trf.xlu1 }
 0x259   : > { %1788 = vmatmul.mubr.msk.bf16.vlgmr.msra.gmra.mxu0 %vm778_vm5, %v834_v45 }
 0x25a   : > { %1798 = vmatpush3.bf16.msra.mxu0 %v970_v41  ;;  %1799 = vmatprep.mubr.msk.bf16.mxu0 %vm2179_vm3, %v2178_v23 }
 0x25b   : > { %1809 = vmatprep.subr.bf16.mxu0 %v2178_v23 }
 0x25c   : > { %v896_v46 = vpop.trf.xlu1 }
 0x25d   : > { %1794 = vmatmul.mubr.msk.bf16.vlgmr.msra.gmra.mxu1 %vm778_vm5, %v896_v46 }
 0x25e   : > { %1805 = vmatprep.mubr.msk.bf16.mxu1 %vm2179_vm3, %v2178_v23 }
 0x260   : > { %v958_v47 = vpop.trf.xlu1 }
 0x261   : > { %1800 = vmatmul.mubr.msk.bf16.vlgmr.msra.gmra.mxu0 %vm778_vm5, %v958_v47 }
 0x262   : > { %1811 = vmatprep.mubr.msk.bf16.mxu0 %vm2179_vm3, %v2178_v23 }
 0x315   : > { %v820_v52 = vpop.f32.mrf.mxu1 }
 0x316   : > { %v821_v53 = vadd.f32 %v1690_v51, %v820_v52  ;;  %v1060_v52 = vpack.c.bf16 %v2469_v49, %v2469_v49 }
 0x317   : > { %v1783_v55 = vpop.f32.mrf.mxu1 }
 0x318   : > { %v1012_v56 = vsel %vm778_vm5, %v821_v53, -inf }
 0x319   : > { %1013 = vmax.xlane.f32.xlu1 %v1012_v56  ;;  %v823_v57 = vpop.f32.mrf.mxu1  ;;  %v882_v58 = vpop.f32.mrf.mxu0 }
 0x31a   : > { %v883_v59 = vadd.f32 %v1690_v51, %v882_v58  ;;  %v1061_v58 = vpack.c.bf16 %v2475_v54, %v2475_v54  ;;  %v1063_v54 = vpack.c.bf16 %v2471_v50, %v2471_v50 }
 0x31b   : > { %v1784_v60 = vpop.f32.mrf.mxu1  ;;  %v1789_v61 = vpop.f32.mrf.mxu0 }
 0x31c   : > { %v1015_v62 = vsel %vm778_vm5, %v883_v59, -inf  ;;  %v1062_v60 = vpack.c.bf16 %v2467_v48, %v2467_v48  ;;  %v1954_v61 = vld [vmem:[%s2619_s5 + $0x8] sm:$0xff]   ;;  %v1955_v48 = vld [vmem:[%s2619_s5] sm:$0xff]  }
 0x31d   : > { %v944_v63 = vpop.f32.mrf.mxu1  ;;  %1016 = vmax.xlane.f32.xlu1 %v1015_v62  ;;  %v885_v0 = vpop.f32.mrf.mxu0 }
 0x31e   : > { %v945_v1 = vadd.f32 %v1690_v51, %v944_v63 }
 0x31f   : > { %v1790_v2 = vpop.f32.mrf.mxu0  ;;  %v1795_v3 = vpop.f32.mrf.mxu1 }
 0x320   : > { %v1018_v4 = vsel %vm778_vm5, %v945_v1, -inf }
 0x321   : > { %v947_v5 = vpop.f32.mrf.mxu1  ;;  %1019 = vmax.xlane.f32.xlu1 %v1018_v4  ;;  %v1006_v6 = vpop.f32.mrf.mxu0 }
 0x322   : > { %v1007_v7 = vadd.f32 %v1690_v51, %v1006_v6 }
 0x323   : > { %v1796_v8 = vpop.f32.mrf.mxu1  ;;  %v1801_v9 = vpop.f32.mrf.mxu0 }
 0x324   : > { %v1021_v10 = vsel %vm778_vm5, %v1007_v7, -inf }
 0x325   : > { %1022 = vmax.xlane.f32.xlu1 %v1021_v10  ;;  %v1009_v11 = vpop.f32.mrf.mxu0 }
 0x327   : > { %v1802_v12 = vpop.f32.mrf.mxu0 }
 0x3a2   : > { %v1014_v13 = vpop.xlane.xlu1 %1013 }
 0x3a3   : > { %v1024_v14 = vsub.f32 %v821_v53, %v1014_v13 }
 0x3a5   : > { %v1028_v16 = vmul.f32 1.442695, %v1024_v14 }
 0x3a6   : > { %v1017_v17 = vpop.xlane.xlu1 %1016 }
 0x3a7   : > { %1970 = vpow2.f32 %v1028_v16  ;;  %v1025_v18 = vsub.f32 %v883_v59, %v1017_v17  ;;  %v1699_v17 = vld [vmem:[#allocation5] ss:$0 sm:$0xff] }
 0x3a9   : > { %v1030_v19 = vmul.f32 1.442695, %v1025_v18 }
 0x3aa   : > { %v1020_v20 = vpop.xlane.xlu1 %1019 }
 0x3ab   : > { %1972 = vpow2.f32 %v1030_v19  ;;  %v1026_v21 = vsub.f32 %v945_v1, %v1020_v20 }
 0x3ad   : > { %v1032_v22 = vmul.f32 1.442695, %v1026_v21 }
 0x3ae   : > { %v1023_v24 = vpop.xlane.xlu1 %1022 }
 0x3af   : > { %1974 = vpow2.f32 %v1032_v22  ;;  %v1027_v25 = vsub.f32 %v1007_v7, %v1023_v24 }
 0x3b1   : > { %v1034_v26 = vmul.f32 1.442695, %v1027_v25 }
 0x3b3   : > { %1976 = vpow2.f32 %v1034_v26 }
 0x3b4   : > { %v1971_v27 = vpop.eup %1970 }
 0x3b5   : > { %v1036_v28 = vsel %vm778_vm5, %v1971_v27, 0.0 }
 0x3b6   : > { %1037 = vadd.xlane.f32.xlu1 %v1036_v28  ;;  %v1957_v28 = vld [vmem:[#allocation7] sm:$0xff]  }
 0x3b8   : > { %v1973_v29 = vpop.eup %1972 }
 0x3b9   : > { %v1039_v30 = vsel %vm778_vm5, %v1973_v29, 0.0 }
 0x3ba   : > { %1040 = vadd.xlane.f32.xlu1 %v1039_v30 }
 0x3bc   : > { %v1975_v31 = vpop.eup %1974 }
 0x3bd   : > { %v1042_v32 = vsel %vm778_vm5, %v1975_v31, 0.0 }
 0x3be   : > { %1043 = vadd.xlane.f32.xlu1 %v1042_v32 }
 0x3c0   : > { %v1977_v33 = vpop.eup %1976 }
 0x3c1   : > { %v1045_v34 = vsel %vm778_vm5, %v1977_v33, 0.0 }
 0x3c2   : > { %1046 = vadd.xlane.f32.xlu0 %v1045_v34 }
 0x43f   : > { %v1038_v35 = vpop.xlane.xlu1 %1037 }
 0x440   : > { %1978 = vrcp.f32 %v1038_v35 }
 0x443   : > { %v1041_v36 = vpop.xlane.xlu1 %1040 }
 0x444   : > { %1980 = vrcp.f32 %v1041_v36 }
 0x447   : > { %v1044_v37 = vpop.xlane.xlu1 %1043 }
 0x448   : > { %1982 = vrcp.f32 %v1044_v37 }
 0x44b   : > { %v1047_v38 = vpop.xlane.xlu0 %1046 }
 0x44c   : > { %1984 = vrcp.f32 %v1047_v38 }
 0x44d   : > { %v1979_v39 = vpop.eup %1978 }
 0x44e   : > { %v1052_v40 = vmul.f32 %v1979_v39, %v1971_v27  ;;  %v1956_v27 = vld [vmem:[#allocation7 + $0x8] sm:$0xff]   ;;  %v1703_v39 = vld [vmem:[%s2626_s12] ss:$0 sm:$0xff] }
 0x450   : > { %v1056_v41 = vpack.c.bf16 %v1052_v40, %v1052_v40 }
 0x451   : > { %v1981_v42 = vpop.eup %1980 }
 0x452   : > { %v1068_v43 = vsel %vm778_vm5, %v1056_v41, 0  ;;  %v1053_v44 = vmul.f32 %v1981_v42, %v1973_v29  ;;  %v1958_v29 = vld [vmem:[%s2623_s9 + $0x38] sm:$0xff]  }
 0x453   : > { %1804 = vmatpush3.bf16.xpose.msra.mxu1 %v1068_v43  ;;  %v1960_v43 = vld [vmem:[%s2623_s9 + $0x28] sm:$0xff]  }
 0x454   : > { %v1057_v45 = vpack.c.bf16 %v1053_v44, %v1053_v44  ;;  %1815 = vmatprep.subr.bf16.mxu1 %v2178_v23  ;;  %v1961_v44 = vld [vmem:[%s2623_s9 + $0x20] sm:$0xff]  }
 0x455   : > { %v1983_v46 = vpop.eup %1982 }
 0x456   : > { %v1114_v47 = vsel %vm778_vm5, %v1057_v45, 0  ;;  %v1054_v51 = vmul.f32 %v1983_v46, %v1975_v31  ;;  %v1962_v45 = vld [vmem:[%s2623_s9 + $0x18] sm:$0xff]   ;;  %v1963_v46 = vld [vmem:[%s2623_s9 + $0x10] sm:$0xff]  }
 0x457   : > { %1810 = vmatpush3.bf16.xpose.msra.mxu0 %v1114_v47  ;;  %v1964_v47 = vld [vmem:[%s2623_s9 + $0x8] sm:$0xff]  }
 0x458   : > { %v1058_v53 = vpack.c.bf16 %v1054_v51, %v1054_v51  ;;  %1821 = vmatprep.subr.bf16.mxu0 %v2178_v23  ;;  %v1965_v51 = vld [vmem:[%s2623_s9] sm:$0xff]  }
 0x459   : > { %v1985_v55 = vpop.eup %1984 }
 0x45a   : > { %1806 = vmatmul.mubr.msk.bf16.vlgmr.msra.gmra.mxu1 %vm778_vm5, %v1060_v52  ;;  %v1160_v56 = vsel %vm778_vm5, %v1058_v53, 0  ;;  %v1055_v57 = vmul.f32 %v1985_v55, %v1977_v33  ;;  %v1704_v52 = vld [vmem:[#allocation8] ss:$0 sm:$0xff] }
 0x45b   : > { %1816 = vmatpush3.bf16.xpose.msra.mxu1 %v1160_v56  ;;  %1817 = vmatprep.mubr.msk.bf16.mxu1 %vm2179_vm3, %v2178_v23 }
 0x45c   : > { %v1059_v59 = vpack.c.bf16 %v1055_v57, %v1055_v57  ;;  %1827 = vmatprep.subr.bf16.mxu1 %v2178_v23 }
 0x45e   : > { %1812 = vmatmul.mubr.msk.bf16.vlgmr.msra.gmra.mxu0 %vm778_vm5, %v1061_v58  ;;  %v1206_v49 = vsel %vm778_vm5, %v1059_v59, 0 }
 0x45f   : > { %1822 = vmatpush3.bf16.xpose.msra.mxu0 %v1206_v49  ;;  %1823 = vmatprep.mubr.msk.bf16.mxu0 %vm2179_vm3, %v2178_v23 }
 0x460   : > { %1835 = vmatprep.subr.bf16.mxu0 %v2178_v23 }
 0x462   : > { %1818 = vmatmul.mubr.msk.bf16.vlgmr.msra.gmra.mxu1 %vm778_vm5, %v1062_v60 }
 0x463   : > { %1831 = vmatprep.mubr.msk.bf16.mxu1 %vm2179_vm3, %v2178_v23  ;;  %1828 = vmatpush3.bf16.msra.mxu1 %v1954_v61 }
 0x464   : > { %1829 = vmatprep.subr.bf16.mxu1 %v2178_v23 }
 0x466   : > { %1824 = vmatmul.mubr.msk.bf16.vlgmr.msra.gmra.mxu0 %vm778_vm5, %v1063_v54 }
 0x467   : > { %1839 = vmatprep.mubr.msk.bf16.mxu0 %vm2179_vm3, %v2178_v23  ;;  %1830 = vmatpush3.bf16.msra.mxu1 %v1955_v48  ;;  %v1708_v48 = vld [vmem:[%s2624_s10] ss:$0 sm:$0xff] }
 0x468   : > { %1843 = vmatprep.subr.bf16.mxu1 %v2178_v23  ;;  %1836 = vmatpush3.bf16.msra.mxu0 %v1956_v27 }
 0x469   : > { %1837 = vmatprep.subr.bf16.mxu0 %v2178_v23 }
 0x46c   : > { %1838 = vmatpush3.bf16.msra.mxu0 %v1957_v28 }
 0x51a   : > { %v1104_v50 = vpop.f32.mrf.mxu1 }
 0x51c   : > { %v1807_v62 = vpop.f32.mrf.mxu1 }
 0x51e   : > { %v1107_v63 = vpop.f32.mrf.mxu1  ;;  %v1150_v0 = vpop.f32.mrf.mxu0 }
 0x51f   : > { %v1248_v1 = vpack.c.bf16 %v1150_v0, %v1104_v50 }
 0x520   : > { %v1808_v2 = vpop.f32.mrf.mxu1  ;;  %v1813_v3 = vpop.f32.mrf.mxu0 }
 0x521   : > { %1261 = vxpose.xlu1.c.b16.start [1/2] (short) (narrow) %v1248_v1, 16 }
 0x522   : > { %v1153_v4 = vpop.f32.mrf.mxu0  ;;  %v1196_v5 = vpop.f32.mrf.mxu1 }
 0x524   : > { %v1814_v6 = vpop.f32.mrf.mxu0  ;;  %v1819_v7 = vpop.f32.mrf.mxu1 }
 0x526   : > { %v1199_v8 = vpop.f32.mrf.mxu1  ;;  %v1242_v9 = vpop.f32.mrf.mxu0 }
 0x527   : > { %v1249_v10 = vpack.c.bf16 %v1242_v9, %v1196_v5 }
 0x528   : > { %v1820_v11 = vpop.f32.mrf.mxu1  ;;  %v1825_v12 = vpop.f32.mrf.mxu0 }
 0x529   : > { %1262 = vxpose.xlu1.c.b16.end [2/2] (short) (narrow) %v1249_v10, 16 }
 0x52a   : > { %v1245_v13 = vpop.f32.mrf.mxu0 }
 0x52c   : > { %v1826_v14 = vpop.f32.mrf.mxu0 }
 0x587   : > { %v1269_v16 = vpop.trf.xlu1 }
 0x588   : > { %1832 = vmatmul.mubr.msk.bf16.vlgmr.msra.gmra.mxu1 %vm514_vm0, %v1269_v16 }
 0x589   : > { %1859 = vmatprep.mubr.msk.bf16.mxu1 %vm2179_vm3, %v2178_v23  ;;  %1844 = vmatpush3.bf16.msra.mxu1 %v1958_v29 }
 0x58a   : > { %1845 = vmatprep.subr.bf16.mxu1 %v2178_v23 }
 0x648   : > { %v1326_v18 = vpop.f32.mrf.mxu1 }
 0x649   : > { %v1327_v19 = vadd.f32 %v1699_v17, %v1326_v18 }
 0x64a   : > { %v1833_v20 = vpop.f32.mrf.mxu1 }
 0x64b   : > { %v1332_v21 = vadd.f32 %v1327_v19, %v2413_v15  ;;  %v1959_v15 = vld [vmem:[%s2623_s9 + $0x30] sm:$0xff]  }
 0x64c   : > { %v1329_v22 = vpop.f32.mrf.mxu1  ;;  %1846 = vmatpush3.bf16.msra.mxu1 %v1959_v15 }
 0x64d   : > { %v1334_v24 = vmul.f32 %v1332_v21, %v1332_v21  ;;  %1847 = vmatprep.subr.bf16.mxu1 %v2178_v23 }
 0x64e   : > { %v1834_v25 = vpop.f32.mrf.mxu1 }
 0x64f   : > { %v1335_v26 = vsel %vm514_vm0, %v1334_v24, 0.0 }
 0x650   : > { %1336 = vadd.xlane.f32.xlu0 %v1335_v26  ;;  %1848 = vmatpush3.bf16.msra.mxu1 %v1960_v43 }
 0x651   : > { %1849 = vmatprep.subr.bf16.mxu1 %v2178_v23 }
 0x654   : > { %1850 = vmatpush3.bf16.msra.mxu1 %v1961_v44 }
 0x655   : > { %1851 = vmatprep.subr.bf16.mxu1 %v2178_v23 }
 0x658   : > { %1852 = vmatpush3.bf16.msra.mxu1 %v1962_v45 }
 0x659   : > { %1853 = vmatprep.subr.bf16.mxu1 %v2178_v23 }
 0x65c   : > { %1854 = vmatpush3.bf16.msra.mxu1 %v1963_v46 }
 0x65d   : > { %1855 = vmatprep.subr.bf16.mxu1 %v2178_v23 }
 0x660   : > { %1856 = vmatpush3.bf16.msra.mxu1 %v1964_v47 }
 0x661   : > { %1857 = vmatprep.subr.bf16.mxu1 %v2178_v23 }
 0x664   : > { %1858 = vmatpush3.bf16.msra.mxu1 %v1965_v51 }
 0x6d9   : > { %v1337_v30 = vpop.xlane.xlu0 %1336 }
 0x6da   : > { %1986 = vrsqrt.f32 %v1337_v30  ;;  %vm1340_vm6 = vcmp.eq.f32.partialorder %v1337_v30, inf  ;;  %v1343_v33 = vand.u32 2147483648, %v1337_v30  ;;  %vm1342_vm7 = vcmp.eq.f32.partialorder %v1337_v30, 0.0 }
 0x6e7   : > { %v1987_v31 = vpop.eup %1986 }
 0x6e8   : > { %v1339_v32 = vmul.f32 %v1987_v31, %v1337_v30 }
 0x6ea   : > { %v1341_v34 = vsel %vm1340_vm6, %v1337_v30, %v1339_v32 }
 0x6eb   : > { %v1344_v35 = vsel %vm1342_vm7, %v1343_v33, %v1341_v34 }
 0x6ec   : > { %v1345_v36 = vmul.f32 0.17677669, %v1344_v35 }
 0x6ee   : > { %v1346_v37 = vadd.f32 1e-08, %v1345_v36 }
 0x6f0   : > { %1988 = vrcp.f32 %v1346_v37 }
 0x6fd   : > { %v1989_v38 = vpop.eup %1988 }
 0x6fe   : > { %v1348_v40 = vmul.f32 %v1989_v38, %v1332_v21 }
 0x700   : > { %v1355_v41 = vmul.f32 %v1703_v39, %v1348_v40 }
 0x702   : > { %v1356_v42 = vpack.c.bf16 %v1355_v41, %v1355_v41 }
 0x704   : > { %1840 = vmatmul.mubr.msk.bf16.vlgmr.msra.gmra.mxu0 %vm514_vm0, %v1356_v42 }
 0x7c4   : > { %v1417_v53 = vpop.f32.mrf.mxu0 }
 0x7c5   : > { %v1418_v55 = vadd.f32 %v1704_v52, %v1417_v53 }
 0x7c6   : > { %v1841_v56 = vpop.f32.mrf.mxu0 }
 0x7c7   : > { %v1424_v57 = vmul.f32 0.70710677, %v1418_v55  ;;  %v1423_v60 = vmul.f32 0.5, %v1418_v55 }
 0x7c8   : > { %v1420_v58 = vpop.f32.mrf.mxu0 }
 0x7c9   : > { %1990 = verf.f32 %v1424_v57 }
 0x7ca   : > { %v1842_v59 = vpop.f32.mrf.mxu0 }
 0x7d6   : > { %v1991_v49 = vpop.eup %1990 }
 0x7d7   : > { %v1426_v54 = vadd.f32 1.0, %v1991_v49 }
 0x7d9   : > { %v1427_v61 = vmul.f32 %v1426_v54, %v1423_v60 }
 0x7db   : > { %v1428_v23 = vpack.c.bf16 %v1427_v61, %v1427_v61 }
 0x7dd   : > { %1860 = vmatmul.mubr.bf16.vlgmr.msra.gmra.mxu1 %v1428_v23 }
 0x89d   : > { %v1534_v50 = vpop.f32.mrf.mxu1 }
 0x89e   : > { %v1535_v62 = vadd.f32 %v1708_v48, %v1534_v50 }
 0x89f   : > { %v1861_v63 = vpop.f32.mrf.mxu1 }
 0x8a0   : > { %v1540_v0 = vadd.f32 %v1535_v62, %v1355_v41 }
 0x8a1   : > { %v1537_v1 = vpop.f32.mrf.mxu1 }
 0x8a2   : > { %1541 = vst.msk [vmem:[%s505_s28] sm:$0xff] %vm514_vm0, %v1540_v0 }
 0x8a3   : > { %v1862_v2 = vpop.f32.mrf.mxu1 }
 0x8a4   : > { %2111 = shalt.err (!%p2108_p9)
}
 0x8a5   : > { %s2112_s23 = scalar_lea.hbm %s2570_s6, 128  ;;  %s2116_s22 = scalar_lea.hbm %s2627_s13, 256 }
 0x8a6   : > { %p2113_p6 = scmp.ne.s32.totalorder %s2570_s6, %s2112_s23  ;;  %p2117_p0 = scmp.lt.s32.totalorder %s2570_s6, %s2627_s13 }
 0x8a7   : > { %p2118_p11 = scmp.lt.s32.totalorder %s2116_s22, %s2112_s23 }
 0x8a8   : > { %p2114_p4 = pnand %p2113_p6, %p2660_p7 }
 0x8a9   : > { %p2119_p5 = por %p2118_p11, %p2117_p0 }
 0x8aa   : > { %p2115_p8 = pneg %p2114_p4 }
 0x8ac   : > { %p2120_p12 = pnand %p2119_p5, %p2115_p8 }
 0x8ae   : > { %2123 = shalt.err (!%p2120_p12)
}
 0x8af   : > { %1880 = dma.vmem_to_hbm [thread:$0]  (%p2660_p7), %s2572_s16, 128, %s2570_s6, %s1543_s29  }
 0x8b0 PF: > { %s2661_s7 = sld [smem:[#allocation17_spill]]  ;;  %s1568_s14 = sand.u32 1, %s2158_s25  }
 0x8b1   : > { %s2662_s28 = sld [smem:[#allocation16_spill]]  ;;  %s1569_s20 = scalar_lea.sflag [#allocation4], %s1568_s14 }
 0x8b6   : > { %p2663_p1 = scmp.ne.s32.totalorder %s2661_s7, 0 }
 0x8b7   : > { %p2664_p10 = scmp.ge.s32.totalorder %s2662_s28, 2 }
 0x8b9   : > { %p1897_p13 = pnand %p2664_p10, %p2663_p1 }
 0x8bb   : > { %p1898_p2 = pneg %p1897_p13 }
 0x8bd   : > { %2153 = dma.done.wait (%p1898_p2), %s1569_s20, 128  }
 0x8be   : > { %2155 = vsyncadd (%p1898_p2), %s1569_s20, 4294967168  ;;  %s2665_s28 = sld [smem:[#allocation18_spill]]  ;;  %s2668_s25 = smov %s2162_s26 }
 0x8bf   : > { %s2666_s19 = sld [smem:[#allocation15_spill]] }
 0x8c0   : > { %s2667_s27 = sld [smem:[#allocation19_spill]] }
 0x8c4   : > { %p28_p3 = scmp.ge.s32.totalorder %s2665_s28, 4  }
 0x8c5   : > { %s2669_s26 = smov %s2666_s19 }
 0x8c6   :  { %30 = sbr.rel (!%p28_p3) target bundleno = 11 (0xb), region = 132 }
 0x8cb   :  { %1574 = vsyncpa [#allocation3], 1 }
 0x8cc   :  { %1576 = vsyncpa [#allocation3 + $0x1], 1 }
 0x8cd   :  { %1577 = vsyncpa [#allocation6], 1 }
 0x8ce   :  { %1578 = vsyncpa [#allocation9], 1 }
 0x8cf   :  { %1579 = vsyncpa [#allocation4], 1 }
 0x8d0   :  { %1581 = vsyncpa [#allocation4 + $0x1], 1 }

</bundles_post_ra>
